<compile_context>
chip_gen: v5e
topology: v5e:2x2
jax: 0.10.0
libtpu: 0.0.40
codegen_flags: <defaults>
</compile_context>

<pallas_src>
import functools

import jax
import jax.numpy as jnp
from jax import lax
from jax.experimental import pallas as pl
from jax.experimental.pallas import tpu as pltpu


def _fused_kernel(*refs, K, stride, W, use_se, images_per_block, C):
    """Fused DepthwiseSeparable block for one block of Nb images.

    Ref layouts (C = in channels, F = out channels, HW = H*W, P = Hout*Wout):
      x_ref    : (Nb*C, HW)   image block, batch*channels on sublanes, flat spatial on lanes
      mask_ref : (K*K, HW)    0/1 zero-padding mask per depthwise tap
      dww_ref  : (Nb*C, K*K)  depthwise taps, BN scale folded in, tiled over the image block
      dwb_ref  : (Nb*C, 1)    BN bias after the depthwise conv (tiled)
      sel_ref  : (HW, P)      bf16 0/1 subsample matrix        (only when stride > 1)
      sew1     : (Cr, C)  seb1: (Cr, 1)                        (only when use_se)
      sew2     : (C, Cr)  seb2: (C, 1)                         (only when use_se)
      pww      : (F, C)   bf16, BN scale folded in
      pwb      : (F, 1)
      o_ref    : (Nb, F, P)
    """
    it = iter(refs)
    x_ref = next(it)
    mask_ref = next(it)
    dww_ref = next(it)
    dwb_ref = next(it)
    sel_ref = next(it) if stride > 1 else None
    if use_se:
        sew1_ref = next(it)
        seb1_ref = next(it)
        sew2_ref = next(it)
        seb2_ref = next(it)
    pww_ref = next(it)
    pwb_ref = next(it)
    o_ref = next(it)

    Nb = images_per_block
    NC, HW = x_ref.shape
    P = o_ref.shape[2]
    pad = (K - 1) // 2
    inv6 = 1.0 / 6.0

    x = x_ref[...]                                   # (Nb*C, HW) f32
    masks = mask_ref[...]                            # (K*K, HW)
    dww = dww_ref[...]                               # (Nb*C, K*K), BN-scale folded

    # ---- depthwise KxK conv on the whole image block: XLU rolls + zero-pad masks ----
    acc = jnp.zeros((NC, HW), jnp.float32)
    for kh in range(K):
        for kw in range(K):
            off = (kh - pad) * W + (kw - pad)
            shifted = x if off == 0 else pltpu.roll(x, shift=(-off) % HW, axis=1)
            t = kh * K + kw
            acc = acc + shifted * (masks[t:t + 1, :] * dww[:, t:t + 1])

    # ---- stride: one exact 0/1 bf16 selection matmul (single MXU pass) ----
    if stride > 1:
        acc = jnp.dot(acc.astype(jnp.bfloat16), sel_ref[...],
                      preferred_element_type=jnp.float32)        # (Nb*C, P)

    # ---- BN bias (scale already folded into the taps) + hardswish ----
    y = acc + dwb_ref[...]
    y = y * (jnp.clip(y + 3.0, 0.0, 6.0) * inv6)                 # (Nb*C, P)

    pw_w = pww_ref[...]                              # (F, C) bf16, BN-scale folded
    pw_b = pwb_ref[...]                              # (F, 1)
    if use_se:
        se_w1, se_b1 = sew1_ref[...], seb1_ref[...]
        se_w2, se_b2 = sew2_ref[...], seb2_ref[...]

    # ---- small per-image tail: SE gate + pointwise 1x1 conv (bf16 MXU) ----
    for n in range(Nb):                              # static, Nb <= 16
        y_img = y[n * C:(n + 1) * C, :]              # (C, P) static slice

        if use_se:
            pooled = jnp.mean(y_img, axis=1, keepdims=True)              # (C, 1)
            pooled_b = jnp.broadcast_to(pooled, (C, 128))                # one vreg wide
            h = jnp.maximum(
                jnp.dot(se_w1, pooled_b, preferred_element_type=jnp.float32) + se_b1,
                0.0)                                                     # (Cr, 128)
            s = jnp.dot(se_w2, h, preferred_element_type=jnp.float32) + se_b2
            s = jnp.clip(s + 3.0, 0.0, 6.0) * inv6                       # (C, 128)
            y_img = y_img * s[:, 0:1]                                    # lane-broadcast gate

        z = jnp.dot(pw_w, y_img.astype(jnp.bfloat16),
                    preferred_element_type=jnp.float32)                  # (F, P)
        z = z + pw_b
        z = z * (jnp.clip(z + 3.0, 0.0, 6.0) * inv6)
        o_ref[n] = z.astype(o_ref.dtype)


def depthwise_separable_fwd(x_nchw, p, *, stride, dw_size, use_se,
                            images_per_block=None):
    """NCHW in / NCHW out, matching the PyTorch DepthwiseSeparable module (eval BN)."""
    N, C, H, W = x_nchw.shape
    K = dw_size
    pad = (K - 1) // 2
    Hout = (H + 2 * pad - K) // stride + 1
    Wout = (W + 2 * pad - K) // stride + 1
    F = p["pw_w"].shape[0]
    HW, P = H * W, Hout * Wout
    assert C % 8 == 0 and F % 8 == 0, "PPLCNet channel counts are sublane-aligned"

    # ---- images_per_block from a VMEM budget; keep >= 2 grid steps for megacore ----
    if images_per_block is None:
        bytes_per_img = 4 * (2 * C * HW + 2 * F * P)      # double-buffered in/out blocks
        bytes_per_img += 4 * (C * HW + C * P + F * P)     # acc / y / z live temporaries
        budget = 4 * 1024 * 1024
        nb_cap = max(1, budget // bytes_per_img)
        nb_cap = int(min(nb_cap, 16, N))
        if N >= 2:
            nb_cap = min(nb_cap, max(1, N // 2))          # grid >= 2 (v7x has 2 TCs)
        images_per_block = max(d for d in range(1, nb_cap + 1) if N % d == 0)
    Nb = images_per_block
    if N % Nb != 0:
        Nb = 1
    grid = (N // Nb,)

    # free reshape: NCHW is already laid out as (N*C, H*W)
    x2 = x_nchw.reshape(N * C, HW).astype(jnp.float32)

    # per-tap zero-padding masks over the flattened spatial axis
    pos = jnp.arange(HW, dtype=jnp.int32)
    h_idx, w_idx = pos // W, pos % W
    rows = []
    for kh in range(K):
        for kw in range(K):
            dh, dw = kh - pad, kw - pad
            rows.append((h_idx + dh >= 0) & (h_idx + dh < H) &
                        (w_idx + dw >= 0) & (w_idx + dw < W))
    tap_mask = jnp.stack(rows, axis=0).astype(jnp.float32)                # (K*K, HW)

    # BN scales folded into the conv weights (biases stay separate); bf16 pre-casts.
    dw_w_fold = p["dw_w"] * p["dw_scale"]                                 # (C, K*K)
    dww_tiled = jnp.tile(dw_w_fold, (Nb, 1))                              # (Nb*C, K*K)
    dwb_tiled = jnp.tile(p["dw_bias"], (Nb, 1))                           # (Nb*C, 1)
    pw_w_fold = (p["pw_w"] * p["pw_scale"]).astype(jnp.bfloat16)          # (F, C) bf16

    ins = [x2, tap_mask, dww_tiled, dwb_tiled]
    if stride > 1:
        q = jnp.arange(P, dtype=jnp.int32)
        src = (q // Wout) * (stride * W) + (q % Wout) * stride
        sel = (pos[:, None] == src[None, :]).astype(jnp.bfloat16)         # exact 0/1
        ins.append(sel)
    if use_se:
        ins += [p["se_w1"], p["se_b1"], p["se_w2"], p["se_b2"]]
    ins += [pw_w_fold, p["pw_bias"]]

    def const_spec(a):
        nd = a.ndim
        return pl.BlockSpec(a.shape, lambda n, _nd=nd: (0,) * _nd)

    in_specs = [pl.BlockSpec((Nb * C, HW), lambda n: (n, 0))] + \
               [const_spec(a) for a in ins[1:]]
    out_specs = pl.BlockSpec((Nb, F, P), lambda n: (n, 0, 0))

    # explicit VMEM limit (v5e scoped default is only 16 MiB; v6e/v7x default 32 MiB)
    const_bytes = sum(int(a.size) * a.dtype.itemsize for a in ins[1:])
    block_bytes = 2 * (Nb * C * HW * 4 + Nb * F * P * 4)
    temp_bytes = 2 * 4 * (Nb * C * HW + Nb * C * P + Nb * F * P)
    vmem_limit = int(min(64 * 1024 * 1024,
                         max(32 * 1024 * 1024,
                             2 * (const_bytes + block_bytes + temp_bytes))))

    kernel = functools.partial(_fused_kernel, K=K, stride=stride, W=W,
                               use_se=use_se, images_per_block=Nb, C=C)
    out = pl.pallas_call(
        kernel,
        out_shape=jax.ShapeDtypeStruct((N, F, P), jnp.float32),
        grid=grid,
        in_specs=in_specs,
        out_specs=out_specs,
        compiler_params=pltpu.CompilerParams(
            dimension_semantics=("parallel",),
            vmem_limit_bytes=vmem_limit),
    )(*ins)
    # (N, F, Hout*Wout) -> NCHW for free; no transpose needed
    return out.reshape(N, F, Hout, Wout)


def init_params(key, C, F, K, reduction=4, eps=1e-5):
    """Deterministic synthetic parameters; BN folded into scale/bias (eval mode)."""
    ks = jax.random.split(key, 14)
    Cr = C // reduction

    dw_w = jax.random.normal(ks[0], (C, 1, K, K), jnp.float32) * 0.2      # torch (C,1,K,K)
    pw_w = jax.random.normal(ks[1], (F, C, 1, 1), jnp.float32) * 0.2      # torch (F,C,1,1)
    se_w1 = jax.random.normal(ks[2], (Cr, C, 1, 1), jnp.float32) * 0.2
    se_b1 = jax.random.normal(ks[3], (Cr,), jnp.float32) * 0.1
    se_w2 = jax.random.normal(ks[4], (C, Cr, 1, 1), jnp.float32) * 0.2
    se_b2 = jax.random.normal(ks[5], (C,), jnp.float32) * 0.1

    def bn_fold(kg, kb, km, kv, n):
        gamma = 1.0 + 0.1 * jax.random.normal(kg, (n,), jnp.float32)
        beta = 0.1 * jax.random.normal(kb, (n,), jnp.float32)
        mean = 0.1 * jax.random.normal(km, (n,), jnp.float32)
        var = 0.5 + jax.random.uniform(kv, (n,), jnp.float32)
        scale = gamma / jnp.sqrt(var + eps)
        bias = beta - mean * scale
        return scale, bias

    dw_scale, dw_bias = bn_fold(ks[6], ks[7], ks[8], ks[9], C)
    pw_scale, pw_bias = bn_fold(ks[10], ks[11], ks[12], ks[13], F)

    return {
        "dw_w": dw_w[:, 0].reshape(C, K * K),           # (C, K*K)
        "dw_scale": dw_scale.reshape(C, 1),
        "dw_bias": dw_bias.reshape(C, 1),
        "se_w1": se_w1[:, :, 0, 0],                     # (Cr, C)
        "se_b1": se_b1.reshape(Cr, 1),
        "se_w2": se_w2[:, :, 0, 0],                     # (C, Cr)
        "se_b2": se_b2.reshape(C, 1),
        "pw_w": pw_w[:, :, 0, 0],                       # (F, C)
        "pw_scale": pw_scale.reshape(F, 1),
        "pw_bias": pw_bias.reshape(F, 1),
    }


def ref_forward(x_nchw, p, *, stride, dw_size, use_se):
    """Pure-JAX reference of the PyTorch forward (eval-mode BN)."""
    K = dw_size
    pad = (K - 1) // 2
    x = jnp.transpose(x_nchw, (0, 2, 3, 1)).astype(jnp.float32)           # NHWC
    C = x.shape[-1]
    dw_hwio = jnp.transpose(p["dw_w"].reshape(C, K, K), (1, 2, 0)).reshape(K, K, 1, C)
    y = lax.conv_general_dilated(
        x, dw_hwio, (stride, stride), [(pad, pad), (pad, pad)],
        dimension_numbers=("NHWC", "HWIO", "NHWC"),
        feature_group_count=C, precision=lax.Precision.HIGHEST)
    y = y * p["dw_scale"].reshape(1, 1, 1, C) + p["dw_bias"].reshape(1, 1, 1, C)
    y = y * jnp.clip(y + 3.0, 0.0, 6.0) / 6.0
    if use_se:
        pooled = jnp.mean(y, axis=(1, 2), keepdims=True)
        h = jnp.maximum(
            jnp.einsum("nhwc,rc->nhwr", pooled, p["se_w1"],
                       precision=lax.Precision.HIGHEST)
            + p["se_b1"].reshape(1, 1, 1, -1), 0.0)
        s = jnp.einsum("nhwr,cr->nhwc", h, p["se_w2"],
                       precision=lax.Precision.HIGHEST) + p["se_b2"].reshape(1, 1, 1, -1)
        s = jnp.clip(s + 3.0, 0.0, 6.0) / 6.0
        y = y * s
    z = jnp.einsum("nhwc,fc->nhwf", y, p["pw_w"], precision=lax.Precision.HIGHEST)
    z = z * p["pw_scale"].reshape(1, 1, 1, -1) + p["pw_bias"].reshape(1, 1, 1, -1)
    z = z * jnp.clip(z + 3.0, 0.0, 6.0) / 6.0
    return jnp.transpose(z, (0, 3, 1, 2))                                 # NCHW


if __name__ == "__main__":
    key = jax.random.PRNGKey(0)
    kx, kp, kx2, kp2 = jax.random.split(key, 4)

    # bf16 MXU ops vs. the f32 HIGHEST-precision reference -> ~1e-2 level tolerance
    TOL = dict(atol=2e-2, rtol=2e-2)

    # DepthwiseSeparable(num_channels=8, num_filters=16, stride=1, dw_size=3, use_se=True)
    N, C, H, W = 2, 8, 16, 16
    F, stride, K = 16, 1, 3

    x = jax.random.normal(kx, (N, C, H, W), jnp.float32)
    params = init_params(kp, C, F, K)

    out = jax.block_until_ready(
        depthwise_separable_fwd(x, params, stride=stride, dw_size=K, use_se=True))
    ref = ref_forward(x, params, stride=stride, dw_size=K, use_se=True)
    assert out.shape == (N, F, H, W), out.shape
    assert bool(jnp.allclose(out, ref, **TOL)), "mismatch vs reference (SE)"

    # use_se=False path (SE params are not even passed to pallas_call)
    out2 = jax.block_until_ready(
        depthwise_separable_fwd(x, params, stride=stride, dw_size=K, use_se=False))
    ref2 = ref_forward(x, params, stride=stride, dw_size=K, use_se=False)
    assert bool(jnp.allclose(out2, ref2, **TOL)), "mismatch (no SE)"

    # stride=2 / dw_size=5 block (blocks6-style); VMEM budget picks 2 images per step here
    N2 = 4
    x2 = jax.random.normal(kx2, (N2, C, H, W), jnp.float32)
    params2 = init_params(kp2, C, F, 5)
    out3 = jax.block_until_ready(
        depthwise_separable_fwd(x2, params2, stride=2, dw_size=5, use_se=True))
    ref3 = ref_forward(x2, params2, stride=2, dw_size=5, use_se=True)
    assert out3.shape == (N2, F, 8, 8), out3.shape
    assert bool(jnp.allclose(out3, ref3, **TOL)), "mismatch (stride2/k5)"

    print("KERNEL_OK")
</pallas_src>

<mosaic_0001>
module attributes {stable_mosaic.version = 11 : i64} {
  func.func @_fused_kernel(%arg0: i32, %arg1: memref<8x256xf32, #tpu.memory_space<vmem>>, %arg2: memref<9x256xf32, #tpu.memory_space<vmem>>, %arg3: memref<8x9xf32, #tpu.memory_space<vmem>>, %arg4: memref<8x1xf32, #tpu.memory_space<vmem>>, %arg5: memref<2x8xf32, #tpu.memory_space<vmem>>, %arg6: memref<2x1xf32, #tpu.memory_space<vmem>>, %arg7: memref<8x2xf32, #tpu.memory_space<vmem>>, %arg8: memref<8x1xf32, #tpu.memory_space<vmem>>, %arg9: memref<16x8xbf16, #tpu.memory_space<vmem>>, %arg10: memref<16x1xf32, #tpu.memory_space<vmem>>, %arg11: memref<1x16x256xf32, #tpu.memory_space<vmem>>) attributes {dimension_semantics = [#tpu.dimension_semantics<parallel>], iteration_bounds = array<i64: 2>, scalar_prefetch = 0 : i64, scratch_operands = 0 : i64, tpu.core_type = #tpu.core_type<tc>, window_params = [{transform_indices = @transform_0, window_bounds = array<i64: 8, 256>}, {pipeline_mode = #tpu.pipeline_mode<synchronous>, transform_indices = @transform_1, window_bounds = array<i64: 9, 256>}, {pipeline_mode = #tpu.pipeline_mode<synchronous>, transform_indices = @transform_2, window_bounds = array<i64: 8, 9>}, {pipeline_mode = #tpu.pipeline_mode<synchronous>, transform_indices = @transform_3, window_bounds = array<i64: 8, 1>}, {pipeline_mode = #tpu.pipeline_mode<synchronous>, transform_indices = @transform_4, window_bounds = array<i64: 2, 8>}, {pipeline_mode = #tpu.pipeline_mode<synchronous>, transform_indices = @transform_5, window_bounds = array<i64: 2, 1>}, {pipeline_mode = #tpu.pipeline_mode<synchronous>, transform_indices = @transform_6, window_bounds = array<i64: 8, 2>}, {pipeline_mode = #tpu.pipeline_mode<synchronous>, transform_indices = @transform_7, window_bounds = array<i64: 8, 1>}, {pipeline_mode = #tpu.pipeline_mode<synchronous>, transform_indices = @transform_8, window_bounds = array<i64: 16, 8>}, {pipeline_mode = #tpu.pipeline_mode<synchronous>, transform_indices = @transform_9, window_bounds = array<i64: 16, 1>}, {transform_indices = @transform_10, window_bounds = array<i64: 1, 16, 256>}]} {
    %c0 = arith.constant 0 : index
    %c0_0 = arith.constant 0 : index
    %0 = vector.load %arg1[%c0, %c0_0] : memref<8x256xf32, #tpu.memory_space<vmem>>, vector<8x256xf32>
    %c0_1 = arith.constant 0 : index
    %c0_2 = arith.constant 0 : index
    %1 = vector.load %arg2[%c0_1, %c0_2] : memref<9x256xf32, #tpu.memory_space<vmem>>, vector<9x256xf32>
    %c0_3 = arith.constant 0 : index
    %c0_4 = arith.constant 0 : index
    %2 = vector.load %arg3[%c0_3, %c0_4] : memref<8x9xf32, #tpu.memory_space<vmem>>, vector<8x9xf32>
    %cst = arith.constant 0.000000e+00 : f32
    %3 = vector.broadcast %cst : f32 to vector<8x256xf32>
    %c17_i32 = arith.constant 17 : i32
    %4 = tpu.dynamic_rotate %0 by %c17_i32 dim 1 : vector<8x256xf32>, i32 -> vector<8x256xf32>
    %5 = vector.extract_strided_slice %1 {offsets = [0, 0], sizes = [1, 256], strides = [1, 1]} : vector<9x256xf32> to vector<1x256xf32>
    %6 = vector.extract_strided_slice %2 {offsets = [0, 0], sizes = [8, 1], strides = [1, 1]} : vector<8x9xf32> to vector<8x1xf32>
    %7 = vector.broadcast %5 : vector<1x256xf32> to vector<8x256xf32>
    %8 = vector.broadcast %6 : vector<8x1xf32> to vector<8x256xf32>
    %9 = arith.mulf %7, %8 : vector<8x256xf32>
    %10 = arith.mulf %4, %9 : vector<8x256xf32>
    %11 = arith.addf %3, %10 : vector<8x256xf32>
    %c16_i32 = arith.constant 16 : i32
    %12 = tpu.dynamic_rotate %0 by %c16_i32 dim 1 : vector<8x256xf32>, i32 -> vector<8x256xf32>
    %13 = vector.extract_strided_slice %1 {offsets = [1, 0], sizes = [1, 256], strides = [1, 1]} : vector<9x256xf32> to vector<1x256xf32>
    %14 = vector.extract_strided_slice %2 {offsets = [0, 1], sizes = [8, 1], strides = [1, 1]} : vector<8x9xf32> to vector<8x1xf32>
    %15 = vector.broadcast %13 : vector<1x256xf32> to vector<8x256xf32>
    %16 = vector.broadcast %14 : vector<8x1xf32> to vector<8x256xf32>
    %17 = arith.mulf %15, %16 : vector<8x256xf32>
    %18 = arith.mulf %12, %17 : vector<8x256xf32>
    %19 = arith.addf %11, %18 : vector<8x256xf32>
    %c15_i32 = arith.constant 15 : i32
    %20 = tpu.dynamic_rotate %0 by %c15_i32 dim 1 : vector<8x256xf32>, i32 -> vector<8x256xf32>
    %21 = vector.extract_strided_slice %1 {offsets = [2, 0], sizes = [1, 256], strides = [1, 1]} : vector<9x256xf32> to vector<1x256xf32>
    %22 = vector.extract_strided_slice %2 {offsets = [0, 2], sizes = [8, 1], strides = [1, 1]} : vector<8x9xf32> to vector<8x1xf32>
    %23 = vector.broadcast %21 : vector<1x256xf32> to vector<8x256xf32>
    %24 = vector.broadcast %22 : vector<8x1xf32> to vector<8x256xf32>
    %25 = arith.mulf %23, %24 : vector<8x256xf32>
    %26 = arith.mulf %20, %25 : vector<8x256xf32>
    %27 = arith.addf %19, %26 : vector<8x256xf32>
    %c1_i32 = arith.constant 1 : i32
    %28 = tpu.dynamic_rotate %0 by %c1_i32 dim 1 : vector<8x256xf32>, i32 -> vector<8x256xf32>
    %29 = vector.extract_strided_slice %1 {offsets = [3, 0], sizes = [1, 256], strides = [1, 1]} : vector<9x256xf32> to vector<1x256xf32>
    %30 = vector.extract_strided_slice %2 {offsets = [0, 3], sizes = [8, 1], strides = [1, 1]} : vector<8x9xf32> to vector<8x1xf32>
    %31 = vector.broadcast %29 : vector<1x256xf32> to vector<8x256xf32>
    %32 = vector.broadcast %30 : vector<8x1xf32> to vector<8x256xf32>
    %33 = arith.mulf %31, %32 : vector<8x256xf32>
    %34 = arith.mulf %28, %33 : vector<8x256xf32>
    %35 = arith.addf %27, %34 : vector<8x256xf32>
    %36 = vector.extract_strided_slice %1 {offsets = [4, 0], sizes = [1, 256], strides = [1, 1]} : vector<9x256xf32> to vector<1x256xf32>
    %37 = vector.extract_strided_slice %2 {offsets = [0, 4], sizes = [8, 1], strides = [1, 1]} : vector<8x9xf32> to vector<8x1xf32>
    %38 = vector.broadcast %36 : vector<1x256xf32> to vector<8x256xf32>
    %39 = vector.broadcast %37 : vector<8x1xf32> to vector<8x256xf32>
    %40 = arith.mulf %38, %39 : vector<8x256xf32>
    %41 = arith.mulf %0, %40 : vector<8x256xf32>
    %42 = arith.addf %35, %41 : vector<8x256xf32>
    %c255_i32 = arith.constant 255 : i32
    %43 = tpu.dynamic_rotate %0 by %c255_i32 dim 1 : vector<8x256xf32>, i32 -> vector<8x256xf32>
    %44 = vector.extract_strided_slice %1 {offsets = [5, 0], sizes = [1, 256], strides = [1, 1]} : vector<9x256xf32> to vector<1x256xf32>
    %45 = vector.extract_strided_slice %2 {offsets = [0, 5], sizes = [8, 1], strides = [1, 1]} : vector<8x9xf32> to vector<8x1xf32>
    %46 = vector.broadcast %44 : vector<1x256xf32> to vector<8x256xf32>
    %47 = vector.broadcast %45 : vector<8x1xf32> to vector<8x256xf32>
    %48 = arith.mulf %46, %47 : vector<8x256xf32>
    %49 = arith.mulf %43, %48 : vector<8x256xf32>
    %50 = arith.addf %42, %49 : vector<8x256xf32>
    %c241_i32 = arith.constant 241 : i32
    %51 = tpu.dynamic_rotate %0 by %c241_i32 dim 1 : vector<8x256xf32>, i32 -> vector<8x256xf32>
    %52 = vector.extract_strided_slice %1 {offsets = [6, 0], sizes = [1, 256], strides = [1, 1]} : vector<9x256xf32> to vector<1x256xf32>
    %53 = vector.extract_strided_slice %2 {offsets = [0, 6], sizes = [8, 1], strides = [1, 1]} : vector<8x9xf32> to vector<8x1xf32>
    %54 = vector.broadcast %52 : vector<1x256xf32> to vector<8x256xf32>
    %55 = vector.broadcast %53 : vector<8x1xf32> to vector<8x256xf32>
    %56 = arith.mulf %54, %55 : vector<8x256xf32>
    %57 = arith.mulf %51, %56 : vector<8x256xf32>
    %58 = arith.addf %50, %57 : vector<8x256xf32>
    %c240_i32 = arith.constant 240 : i32
    %59 = tpu.dynamic_rotate %0 by %c240_i32 dim 1 : vector<8x256xf32>, i32 -> vector<8x256xf32>
    %60 = vector.extract_strided_slice %1 {offsets = [7, 0], sizes = [1, 256], strides = [1, 1]} : vector<9x256xf32> to vector<1x256xf32>
    %61 = vector.extract_strided_slice %2 {offsets = [0, 7], sizes = [8, 1], strides = [1, 1]} : vector<8x9xf32> to vector<8x1xf32>
    %62 = vector.broadcast %60 : vector<1x256xf32> to vector<8x256xf32>
    %63 = vector.broadcast %61 : vector<8x1xf32> to vector<8x256xf32>
    %64 = arith.mulf %62, %63 : vector<8x256xf32>
    %65 = arith.mulf %59, %64 : vector<8x256xf32>
    %66 = arith.addf %58, %65 : vector<8x256xf32>
    %c239_i32 = arith.constant 239 : i32
    %67 = tpu.dynamic_rotate %0 by %c239_i32 dim 1 : vector<8x256xf32>, i32 -> vector<8x256xf32>
    %68 = vector.extract_strided_slice %1 {offsets = [8, 0], sizes = [1, 256], strides = [1, 1]} : vector<9x256xf32> to vector<1x256xf32>
    %69 = vector.extract_strided_slice %2 {offsets = [0, 8], sizes = [8, 1], strides = [1, 1]} : vector<8x9xf32> to vector<8x1xf32>
    %70 = vector.broadcast %68 : vector<1x256xf32> to vector<8x256xf32>
    %71 = vector.broadcast %69 : vector<8x1xf32> to vector<8x256xf32>
    %72 = arith.mulf %70, %71 : vector<8x256xf32>
    %73 = arith.mulf %67, %72 : vector<8x256xf32>
    %74 = arith.addf %66, %73 : vector<8x256xf32>
    %c0_5 = arith.constant 0 : index
    %c0_6 = arith.constant 0 : index
    %75 = vector.load %arg4[%c0_5, %c0_6] : memref<8x1xf32, #tpu.memory_space<vmem>>, vector<8x1xf32>
    %76 = vector.broadcast %75 : vector<8x1xf32> to vector<8x256xf32>
    %77 = arith.addf %74, %76 : vector<8x256xf32>
    %cst_7 = arith.constant 3.000000e+00 : f32
    %78 = vector.broadcast %cst_7 : f32 to vector<8x256xf32>
    %79 = arith.addf %77, %78 : vector<8x256xf32>
    %cst_8 = arith.constant 0.000000e+00 : f32
    %cst_9 = arith.constant 6.000000e+00 : f32
    %80 = vector.broadcast %cst_8 : f32 to vector<8x256xf32>
    %81 = arith.maximumf %80, %79 : vector<8x256xf32>
    %82 = vector.broadcast %cst_9 : f32 to vector<8x256xf32>
    %83 = arith.minimumf %82, %81 : vector<8x256xf32>
    %cst_10 = arith.constant 0.166666672 : f32
    %84 = vector.broadcast %cst_10 : f32 to vector<8x256xf32>
    %85 = arith.mulf %83, %84 : vector<8x256xf32>
    %86 = arith.mulf %77, %85 : vector<8x256xf32>
    %c0_11 = arith.constant 0 : index
    %c0_12 = arith.constant 0 : index
    %87 = vector.load %arg9[%c0_11, %c0_12] : memref<16x8xbf16, #tpu.memory_space<vmem>>, vector<16x8xbf16>
    %c0_13 = arith.constant 0 : index
    %c0_14 = arith.constant 0 : index
    %88 = vector.load %arg10[%c0_13, %c0_14] : memref<16x1xf32, #tpu.memory_space<vmem>>, vector<16x1xf32>
    %c0_15 = arith.constant 0 : index
    %c0_16 = arith.constant 0 : index
    %89 = vector.load %arg5[%c0_15, %c0_16] : memref<2x8xf32, #tpu.memory_space<vmem>>, vector<2x8xf32>
    %c0_17 = arith.constant 0 : index
    %c0_18 = arith.constant 0 : index
    %90 = vector.load %arg6[%c0_17, %c0_18] : memref<2x1xf32, #tpu.memory_space<vmem>>, vector<2x1xf32>
    %c0_19 = arith.constant 0 : index
    %c0_20 = arith.constant 0 : index
    %91 = vector.load %arg7[%c0_19, %c0_20] : memref<8x2xf32, #tpu.memory_space<vmem>>, vector<8x2xf32>
    %c0_21 = arith.constant 0 : index
    %c0_22 = arith.constant 0 : index
    %92 = vector.load %arg8[%c0_21, %c0_22] : memref<8x1xf32, #tpu.memory_space<vmem>>, vector<8x1xf32>
    %cst_23 = arith.constant dense<0.000000e+00> : vector<8xf32>
    %93 = vector.multi_reduction <add>, %86, %cst_23 [1] : vector<8x256xf32> to vector<8xf32>
    %94 = vector.shape_cast %93 : vector<8xf32> to vector<8x1xf32>
    %cst_24 = arith.constant 2.560000e+02 : f32
    %95 = vector.broadcast %cst_24 : f32 to vector<8x1xf32>
    %96 = arith.divf %94, %95 : vector<8x1xf32>
    %97 = vector.shape_cast %96 : vector<8x1xf32> to vector<8x1xf32>
    %98 = vector.broadcast %97 : vector<8x1xf32> to vector<8x128xf32>
    %cst_25 = arith.constant dense<0.000000e+00> : vector<2x128xf32>
    %99 = tpu.matmul %89, %98, %cst_25 {dimension_numbers = #tpu.dot_dimension_numbers<[1], [0], [0], [1], [0, 0, 1, 1], [], []>} : vector<2x8xf32>, vector<8x128xf32>, vector<2x128xf32> -> vector<2x128xf32>
    %100 = vector.broadcast %90 : vector<2x1xf32> to vector<2x128xf32>
    %101 = arith.addf %99, %100 : vector<2x128xf32>
    %cst_26 = arith.constant 0.000000e+00 : f32
    %102 = vector.broadcast %cst_26 : f32 to vector<2x128xf32>
    %103 = arith.maximumf %101, %102 : vector<2x128xf32>
    %cst_27 = arith.constant dense<0.000000e+00> : vector<8x128xf32>
    %104 = tpu.matmul %91, %103, %cst_27 {dimension_numbers = #tpu.dot_dimension_numbers<[1], [0], [0], [1], [0, 0, 1, 1], [], []>} : vector<8x2xf32>, vector<2x128xf32>, vector<8x128xf32> -> vector<8x128xf32>
    %105 = vector.broadcast %92 : vector<8x1xf32> to vector<8x128xf32>
    %106 = arith.addf %104, %105 : vector<8x128xf32>
    %cst_28 = arith.constant 3.000000e+00 : f32
    %107 = vector.broadcast %cst_28 : f32 to vector<8x128xf32>
    %108 = arith.addf %106, %107 : vector<8x128xf32>
    %cst_29 = arith.constant 0.000000e+00 : f32
    %cst_30 = arith.constant 6.000000e+00 : f32
    %109 = vector.broadcast %cst_29 : f32 to vector<8x128xf32>
    %110 = arith.maximumf %109, %108 : vector<8x128xf32>
    %111 = vector.broadcast %cst_30 : f32 to vector<8x128xf32>
    %112 = arith.minimumf %111, %110 : vector<8x128xf32>
    %cst_31 = arith.constant 0.166666672 : f32
    %113 = vector.broadcast %cst_31 : f32 to vector<8x128xf32>
    %114 = arith.mulf %112, %113 : vector<8x128xf32>
    %115 = vector.extract_strided_slice %114 {offsets = [0, 0], sizes = [8, 1], strides = [1, 1]} : vector<8x128xf32> to vector<8x1xf32>
    %116 = vector.broadcast %115 : vector<8x1xf32> to vector<8x256xf32>
    %117 = arith.mulf %86, %116 : vector<8x256xf32>
    %118 = arith.truncf %117 : vector<8x256xf32> to vector<8x256xbf16>
    %cst_32 = arith.constant dense<0.000000e+00> : vector<16x256xf32>
    %119 = tpu.matmul %87, %118, %cst_32 {dimension_numbers = #tpu.dot_dimension_numbers<[1], [0], [0], [1], [0, 0, 1, 1], [], []>} : vector<16x8xbf16>, vector<8x256xbf16>, vector<16x256xf32> -> vector<16x256xf32>
    %120 = vector.broadcast %88 : vector<16x1xf32> to vector<16x256xf32>
    %121 = arith.addf %119, %120 : vector<16x256xf32>
    %cst_33 = arith.constant 3.000000e+00 : f32
    %122 = vector.broadcast %cst_33 : f32 to vector<16x256xf32>
    %123 = arith.addf %121, %122 : vector<16x256xf32>
    %cst_34 = arith.constant 0.000000e+00 : f32
    %cst_35 = arith.constant 6.000000e+00 : f32
    %124 = vector.broadcast %cst_34 : f32 to vector<16x256xf32>
    %125 = arith.maximumf %124, %123 : vector<16x256xf32>
    %126 = vector.broadcast %cst_35 : f32 to vector<16x256xf32>
    %127 = arith.minimumf %126, %125 : vector<16x256xf32>
    %cst_36 = arith.constant 0.166666672 : f32
    %128 = vector.broadcast %cst_36 : f32 to vector<16x256xf32>
    %129 = arith.mulf %127, %128 : vector<16x256xf32>
    %130 = arith.mulf %121, %129 : vector<16x256xf32>
    %c0_37 = arith.constant 0 : index
    %c0_38 = arith.constant 0 : index
    %c0_39 = arith.constant 0 : index
    %131 = vector.load %arg11[%c0_37, %c0_38, %c0_39] : memref<1x16x256xf32, #tpu.memory_space<vmem>>, vector<1x16x256xf32>
    %132 = vector.shape_cast %131 : vector<1x16x256xf32> to vector<16x256xf32>
    %133 = vector.shape_cast %130 : vector<16x256xf32> to vector<1x16x256xf32>
    tpu.vector_store %arg11[%c0_37, %c0_38, %c0_39], %133 {strides = array<i32>} : memref<1x16x256xf32, #tpu.memory_space<vmem>>, vector<1x16x256xf32>,
    return
  }
  func.func @transform_0(%arg0: i32) -> (i32, i32) {
    %c0_i32 = arith.constant 0 : i32
    %c0_i32_0 = arith.constant 0 : i32
    return %arg0, %c0_i32 : i32, i32
  }
  func.func @transform_1(%arg0: i32) -> (i32, i32) {
    %c0_i32 = arith.constant 0 : i32
    %c0_i32_0 = arith.constant 0 : i32
    %c0_i32_1 = arith.constant 0 : i32
    return %c0_i32, %c0_i32_0 : i32, i32
  }
  func.func @transform_2(%arg0: i32) -> (i32, i32) {
    %c0_i32 = arith.constant 0 : i32
    %c0_i32_0 = arith.constant 0 : i32
    %c0_i32_1 = arith.constant 0 : i32
    return %c0_i32, %c0_i32_0 : i32, i32
  }
  func.func @transform_3(%arg0: i32) -> (i32, i32) {
    %c0_i32 = arith.constant 0 : i32
    %c0_i32_0 = arith.constant 0 : i32
    %c0_i32_1 = arith.constant 0 : i32
    return %c0_i32, %c0_i32_0 : i32, i32
  }
  func.func @transform_4(%arg0: i32) -> (i32, i32) {
    %c0_i32 = arith.constant 0 : i32
    %c0_i32_0 = arith.constant 0 : i32
    %c0_i32_1 = arith.constant 0 : i32
    return %c0_i32, %c0_i32_0 : i32, i32
  }
  func.func @transform_5(%arg0: i32) -> (i32, i32) {
    %c0_i32 = arith.constant 0 : i32
    %c0_i32_0 = arith.constant 0 : i32
    %c0_i32_1 = arith.constant 0 : i32
    return %c0_i32, %c0_i32_0 : i32, i32
  }
  func.func @transform_6(%arg0: i32) -> (i32, i32) {
    %c0_i32 = arith.constant 0 : i32
    %c0_i32_0 = arith.constant 0 : i32
    %c0_i32_1 = arith.constant 0 : i32
    return %c0_i32, %c0_i32_0 : i32, i32
  }
  func.func @transform_7(%arg0: i32) -> (i32, i32) {
    %c0_i32 = arith.constant 0 : i32
    %c0_i32_0 = arith.constant 0 : i32
    %c0_i32_1 = arith.constant 0 : i32
    return %c0_i32, %c0_i32_0 : i32, i32
  }
  func.func @transform_8(%arg0: i32) -> (i32, i32) {
    %c0_i32 = arith.constant 0 : i32
    %c0_i32_0 = arith.constant 0 : i32
    %c0_i32_1 = arith.constant 0 : i32
    return %c0_i32, %c0_i32_0 : i32, i32
  }
  func.func @transform_9(%arg0: i32) -> (i32, i32) {
    %c0_i32 = arith.constant 0 : i32
    %c0_i32_0 = arith.constant 0 : i32
    %c0_i32_1 = arith.constant 0 : i32
    return %c0_i32, %c0_i32_0 : i32, i32
  }
  func.func @transform_10(%arg0: i32) -> (i32, i32, i32) {
    %c0_i32 = arith.constant 0 : i32
    %c0_i32_0 = arith.constant 0 : i32
    %c0_i32_1 = arith.constant 0 : i32
    return %arg0, %c0_i32, %c0_i32_0 : i32, i32, i32
  }
}

</mosaic_0001>

<bundles_post_ra>
// kernel: tpu_custom_call.1
= control target key start
LH: loop header
LB: loop body
LE: loop exit
PB: predicated region body
PF: predicated region fallthrough
CT: control target
= control target key end

     0   :  { %s1444_s0 = inlined_call_operand.hbm [shape: f32[16,256], index: 0, kind: input, shape index: {}]   ;;  %s1445_s1 = inlined_call_operand.hbm [shape: f32[9,256], index: 1, kind: input, shape index: {}]   ;;  %s1446_s2 = inlined_call_operand.vmem [shape: f32[8,9], index: 2, kind: input, shape index: {}]   ;;  %s1447_s3 = inlined_call_operand.vmem [shape: f32[8,1], index: 3, kind: input, shape index: {}]   ;;  %s1448_s4 = inlined_call_operand.vmem [shape: f32[2,8], index: 4, kind: input, shape index: {}]   ;;  %s1449_s5 = inlined_call_operand.vmem [shape: f32[2,1], index: 5, kind: input, shape index: {}]   ;;  %s1450_s6 = inlined_call_operand.vmem [shape: f32[8,2], index: 6, kind: input, shape index: {}]   ;;  %s1451_s7 = inlined_call_operand.vmem [shape: f32[8,1], index: 7, kind: input, shape index: {}]   ;;  %s1452_s8 = inlined_call_operand.vmem [shape: bf16[16,8], index: 8, kind: input, shape index: {}]   ;;  %s1453_s9 = inlined_call_operand.vmem [shape: f32[16,1], index: 9, kind: input, shape index: {}]   ;;  %s1454_s10 = inlined_call_operand.hbm [shape: f32[2,16,256], index: 10, kind: output, shape index: {}]  }
   0x1   :  { %1458 = sst [smem:[#allocation14_spill]] %s1445_s1 }
   0x2   :  { %15 = vsyncpa [#allocation3], 0 }
   0x3   :  { %17 = vsyncpa [#allocation3 + $0x1], 0 }
   0x4   :  { %18 = vsyncpa [#allocation6], 0 }
   0x5   :  { %19 = vsyncpa [#allocation4], 0 }
   0x6   :  { %21 = vsyncpa [#allocation4 + $0x1], 0  ;;  %s1190_s13 = smov 0   ;;  %s1192_s14 = smov 0  }
   0x7   :  { %s1194_s15 = smov 0   ;;  %s1196_s16 = smov 0  }
   0x8 LB: > { %1459 = sst [smem:[#allocation11_spill]] %s1107_s15  ;;  %s1214_s20 = sadd.s32 4294967295, %s1111_s16   ;;  %s1111_s16 = sphi %s1196_s16, %s1469_s16   ;;  %s1107_s15 = sphi %s1194_s15, %s1471_s15   ;;  %s1103_s14 = sphi %s1192_s14, %s1473_s14   ;;  %s1099_s13 = sphi %s1190_s13, %s1472_s13  }
   0x9   : > { %s1460_s1 = sld [smem:[#allocation14_spill]]  ;;  %p860_p0 = scmp.ge.s32.totalorder %s1111_s16, 1 }
   0xa   : > { %p48_p1 = scmp.eq.s32.totalorder %s1214_s20, 0  ;;  %p273_p2 = scmp.lt.s32.totalorder %s1111_s16, 3 }
   0xb   : > { %s1113_s22 = smov [#allocation5]   ;;  %s1114_s24 = smov 256  }
   0xc   : > { %p1219_p3 = pnand %p860_p0, %p273_p2  ;;  %s286_s23 = sshll.u32 %s1113_s22, 4  ;;  %s287_s23 = int_to_ptr.vmem [resolvable:$true] %s286_s23 }
   0xd   : > { %s1115_s25 = smov 16   ;;  %s859_s26 = sadd.s32 4294967294, %s1111_s16  }
   0xe   : > { %p895_p4 = pneg %p1219_p3  ;;  %s1230_s27 = sadd.s32 1, %s1111_s16  }
   0xf   : > { %s284_s19 = sshll.u32 %s1460_s1, 4  ;;  %1462 = sst [smem:[#allocation12_spill]] %s1230_s27  ;;  %s285_s19 = int_to_ptr.hbm [resolvable:$true] %s284_s19 }
  0x10   : > { %p896_p6 = pnand %p895_p4, %p48_p1  ;;  %s34_s28 = sadd.s32 1, %s1107_s15 }
  0x11   : > { %s31_s29 = ssub.s32 %s1111_s16, %s1230_s27  ;;  %p41_p7 = scmp.ne.s32.totalorder %s1107_s15, %s1103_s14 }
  0x12   : > { %898 = dma.hbm_to_vmem [thread:$0]  (!%p896_p6), %s285_s19, 512, %s287_s23, [#allocation6], %s1114_s24, %s1114_s24, %s1115_s25  }
  0x13   : > { %p32_p8 = scmp.eq.s32.totalorder %s31_s29, 0  ;;  %p42_p9 = scmp.eq.s32.totalorder %s1111_s16, 0 }
  0x14   : > { %p47_p10 = scmp.ne.s32.totalorder %s1103_s14, %s1099_s13  ;;  %p260_p11 = scmp.eq.s32.totalorder %s1214_s20, 1 }
  0x15   : > { %s1242_s30 = scalar_select %p32_p8, %s1107_s15, %s34_s28  }
  0x16   : > { %p1246_p12 = por %p48_p1, %p47_p10  ;;  %p1250_p13 = por %p260_p11, %p41_p7 }
  0x17   : > { %1463 = sst [smem:[#allocation13_spill]] %s1242_s30  ;;  %p266_p0 = scmp.eq.s32.totalorder %s859_s26, 1 }
  0x18   : > { %p43_p2 = por %p42_p9, %p41_p7  ;;  %s324_s17 = sand.u32 1, %s1107_s15  }
  0x19   : > { %p1255_p4 = por %p266_p0, %p47_p10  ;;  %p908_p6 = scmp.lt.s32.totalorder %s1111_s16, 2 }
  0x1a   : > { %s863_s19 = sshll.u32 %s324_s17, 4  ;;  %s884_s22 = sshll.u32 %s1111_s16, 4 }
  0x1b   : > { %s333_s25 = scalar_lea.hbm %s1444_s0, %s884_s22  ;;  %s328_s29 = scalar_lea.vmem [#allocation2], %s863_s19 }
  0x1c   : > { %s335_s28 = sshll.u32 %s333_s25, 4  ;;  %s337_s1 = sshll.u32 %s328_s29, 4  ;;  %s336_s28 = int_to_ptr.hbm [resolvable:$true] %s335_s28  ;;  %s338_s1 = int_to_ptr.vmem [resolvable:$true] %s337_s1 }
  0x1d   : > { %p1264_p8 = pnand %p908_p6, %p43_p2  ;;  %s325_s30 = scalar_lea.sflag [#allocation3], %s324_s17 }
  0x1e   : > { %s1011_s15 = sshra.s32 %s336_s28, 4  ;;  %s1018_s19 = scalar_lea.hbm %s1444_s0, 32  ;;  %s1012_s15 = int_to_ptr.hbm [resolvable:$true] %s1011_s15 }
  0x1f   : > { %s1013_s27 = scalar_lea.hbm %s1012_s15, 16  ;;  %p1015_p9 = pneg %p1264_p8 }
  0x20   : > { %p1014_p7 = scmp.ne.s32.totalorder %s1012_s15, %s1013_s27  ;;  %p1019_p0 = scmp.lt.s32.totalorder %s1012_s15, %s1444_s0 }
  0x21   : > { %p1020_p2 = scmp.lt.s32.totalorder %s1018_s19, %s1013_s27 }
  0x22   : > { %p1016_p10 = pnand %p1015_p9, %p1014_p7 }
  0x23   : > { %p1021_p6 = por %p1020_p2, %p1019_p0 }
  0x24   : > { %p1017_p11 = pneg %p1016_p10 }
  0x26   : > { %p1022_p5 = pnand %p1021_p6, %p1017_p11 }
  0x28   : > { %1025 = shalt.err (!%p1022_p5)
}
  0x29   : > { %902 = dma.hbm_to_vmem [thread:$0]  (!%p1264_p8), %s336_s28, 256, %s338_s1, %s325_s30  }
  0x2a   : > { %346 = sbr.rel (%p1219_p3) target bundleno = 918 (0x396), region = 60  ;;  %s1281_s17 = sand.u32 (!%p1219_p3), 1, %s1103_s14  }
  0x2b   : > { %s867_s29 = sshll.u32 (!%p1219_p3), %s1281_s17, 4  ;;  %s349_s22 = scalar_lea.sflag (!%p1219_p3), [#allocation3], %s1281_s17 }
  0x2c   : > { %s352_s23 = scalar_lea.vmem (!%p1219_p3), [#allocation2], %s867_s29 }
  0x2f   : > { %1086 = dma.done.wait (%p1246_p12), %s349_s22, 256  }
  0x30   : > { %1088 = vsyncadd (%p1246_p12), %s349_s22, 4294967040 }
  0x31   : > { %1090 = dma.done.wait (%p48_p1), [#allocation6], 512  }
  0x32   : > { %1092 = vsyncadd (%p48_p1), [#allocation6], 4294966784  ;;  %v1116_v0 = vmov 0   ;;  %v1117_v1 = vmov 2   ;;  %v402_v2 = vld [vmem:[%s1446_s2] sm:$0xff]  ;;  %s1118_s21 = smov 17   ;;  %v407_v30 = vlaneseq }
  0x33   : > { %965 = vset.pattern.permute.xlu0 %v1116_v0  ;;  %967 = vset.pattern.permute.xlu1 %v1117_v1  ;;  %v1296_v3 = vld [vmem:[%s352_s23] sm:$0xff]  ;;  %s1119_s27 = smov 16   ;;  %v1120_v4 = vmov 5   ;;  %v1301_v5 = vld [vmem:[%s352_s23 + $0x8] sm:$0xff]  ;;  %v1121_v6 = vmov 1   ;;  %s1122_s30 = smov 15  }
  0x34   : > { %416 = vperm.xlu0 %965, %v402_v2   ;;  %403 = vrot.lane.b32.xlu1 %v1296_v3, %s1118_s21  ;;  %v1123_v7 = vmov 3   ;;  %s1124_s11 = smov 1   ;;  %v1125_v8 = vmov 4   ;;  %s1126_s28 = smov 127   ;;  %v1128_v9 = vmov 6   ;;  %v1130_v10 = vmov 7  }
  0x35   : > { %425 = vrot.lane.b32.xlu2 %v1296_v3, %s1119_s27  ;;  %s1127_s26 = smov 113   ;;  %s1129_s19 = smov 112   ;;  %v1132_v11 = vmov 8   ;;  %v570_v12 = vld [vmem:[%s1447_s3] sm:$0xff]  ;;  %v1331_v31 = vand.u32 127, %v407_v30  ;;  %v1337_v34 = vld [vmem:[#allocation5 + $0x8] sm:$0xff] }
  0x36   : > { %970 = vset.pattern.permute.xlu2 %v1120_v4  ;;  %s1131_s24 = smov 111   ;;  %v595_v13 = vld [vmem:[%s1451_s7] sm:$0xff]  ;;  %v433_v37 = vperm.slane %v1337_v34, 1  ;;  %v413_v40 = vperm.slane %v1337_v34, 0  ;;  %v452_v44 = vperm.slane %v1337_v34, 2  ;;  %v502_v47 = vperm.slane %v1337_v34, 5 }
  0x37   : > { %v590_v14 = vld [vmem:[%s1453_s9] sm:$0xff]  ;;  %vm429_vm0 = vcmp.lt.s32.totalorder %v1331_v31, 16  ;;  %vm409_vm1 = vcmp.lt.s32.totalorder %v1331_v31, 17  ;;  %vm448_vm2 = vcmp.lt.s32.totalorder %v1331_v31, 15  ;;  %v471_v50 = vperm.slane %v1337_v34, 3  ;;  %s869_s23 = sshll.u32 %s1281_s17, 5 }
  0x38   : > { %v1335_v33 = vld [vmem:[#allocation5] sm:$0xff]  ;;  %vm467_vm3 = vcmp.lt.s32.totalorder %v1331_v31, 1  ;;  %v483_v55 = vperm.slane %v1337_v34, 4  ;;  %vm498_vm4 = vcmp.lt.s32.totalorder %v1331_v31, 127  ;;  %vm517_vm5 = vcmp.lt.s32.totalorder %v1331_v31, 113  ;;  %s886_s1 = sshll.u32 %s1214_s20, 5 }
  0x39   : > { %v432_v36 = vperm.slane %v1335_v33, 1  ;;  %v412_v39 = vperm.slane %v1335_v33, 0  ;;  %v451_v41 = vperm.slane %v1335_v33, 2  ;;  %v501_v46 = vperm.slane %v1335_v33, 5  ;;  %s394_s15 = scalar_lea.vmem [#allocation7], %s869_s23  ;;  %s761_s20 = scalar_lea.sflag [#allocation4], %s1281_s17 }
  0x3a   : > { %v470_v48 = vperm.slane %v1335_v33, 3  ;;  %v520_v51 = vperm.slane %v1335_v33, 6  ;;  %v482_v54 = vperm.slane %v1335_v33, 4  ;;  %vm536_vm6 = vcmp.lt.s32.totalorder %v1331_v31, 112  ;;  %s1061_s22 = scalar_lea.hbm %s1454_s10, 64 }
  0x3b   : > { %vm555_vm7 = vcmp.lt.s32.totalorder %v1331_v31, 111  ;;  %vm612_vm9 = vcmask 64512   ;;  %vm646_vm10 = vcmask 1041408   ;;  %vm642_vm11 = vcmask 15360  }
  0x3c   : > { %966 = vset.pattern.permute.xlu0 %v1121_v6  ;;  %405 = vrot.lane.b32.xlu1 %v1301_v5, %s1118_s21  ;;  %vm701_vm12 = vcmask 1043456  }
  0x3d   : > { %435 = vperm.xlu0 %966, %v402_v2   ;;  %427 = vrot.lane.b32.xlu2 %v1301_v5, %s1119_s27 }
  0x44   : > { %454 = vperm.xlu1 %967, %v402_v2  }
  0x45   : > { %446 = vrot.lane.b32.xlu0 %v1301_v5, %s1122_s30  ;;  %444 = vrot.lane.b32.xlu2 %v1296_v3, %s1122_s30 }
  0x46   : > { %976 = vset.pattern.permute.xlu0 %v1116_v0 }
  0x4c   : > { %968 = vset.pattern.permute.xlu1 %v1123_v7 }
  0x4d   : > { %473 = vperm.xlu1 %968, %v402_v2   ;;  %465 = vrot.lane.b32.xlu0 %v1301_v5, %s1124_s11 }
  0x4e   : > { %463 = vrot.lane.b32.xlu2 %v1296_v3, %s1124_s11  ;;  %s772_s11 = scalar_lea.hbm %s1454_s10, %s886_s1 }
  0x55   : > { %969 = vset.pattern.permute.xlu1 %v1125_v8  ;;  %494 = vrot.lane.b32.xlu0 %v1296_v3, %s1126_s28 }
  0x56   : > { %485 = vperm.xlu1 %969, %v402_v2   ;;  %504 = vperm.xlu2 %970, %v402_v2  }
  0x5d   : > { %513 = vrot.lane.b32.xlu0 %v1296_v3, %s1127_s26 }
  0x5e   : > { %496 = vrot.lane.b32.xlu1 %v1301_v5, %s1126_s28  ;;  %971 = vset.pattern.permute.xlu2 %v1128_v9  ;;  %s773_s28 = sshll.u32 %s394_s15, 4  ;;  %s774_s28 = int_to_ptr.vmem [resolvable:$true] %s773_s28 }
  0x5f   : > { %523 = vperm.xlu2 %971, %v402_v2   ;;  %975 = vset.pattern.permute.xlu1 %v1116_v0 }
  0x65   : > { %532 = vrot.lane.b32.xlu0 %v1296_v3, %s1129_s19 }
  0x66   : > { %515 = vrot.lane.b32.xlu1 %v1301_v5, %s1127_s26  ;;  %s775_s26 = sshll.u32 %s772_s11, 4  ;;  %s776_s26 = int_to_ptr.hbm [resolvable:$true] %s775_s26 }
  0x67   : > { %972 = vset.pattern.permute.xlu2 %v1130_v10 }
  0x68   : > { %542 = vperm.xlu2 %972, %v402_v2  }
  0x6d   : > { %551 = vrot.lane.b32.xlu0 %v1296_v3, %s1131_s24 }
  0x6e   : > { %534 = vrot.lane.b32.xlu1 %v1301_v5, %s1129_s19  ;;  %s1055_s19 = sshra.s32 %s776_s26, 4  ;;  %s1056_s19 = int_to_ptr.hbm [resolvable:$true] %s1055_s19 }
  0x6f   : > { %p1062_p12 = scmp.lt.s32.totalorder %s1056_s19, %s1454_s10 }
  0x70   : > { %973 = vset.pattern.permute.xlu2 %v1132_v11 }
  0x71   : > { %561 = vperm.xlu2 %973, %v402_v2  }
  0x76   : > { %553 = vrot.lane.b32.xlu1 %v1301_v5, %s1131_s24  ;;  %s1057_s24 = scalar_lea.hbm %s1056_s19, 32 }
  0x77   : > { %p1058_p1 = scmp.ne.s32.totalorder %s1056_s19, %s1057_s24  ;;  %p1063_p8 = scmp.lt.s32.totalorder %s1061_s22, %s1057_s24 }
  0x79   : > { %974 = vset.pattern.permute.xlu2 %v1116_v0  ;;  %v521_v0 = vperm.slane %v1337_v34, 6  ;;  %p1059_p3 = pnand %p1058_p1, %p1250_p13  ;;  %p1064_p7 = por %p1063_p8, %p1062_p12 }
  0x7a   : > { %573 = vperm.xlu2 %974, %v570_v12  }
  0x7b   : > { %p1060_p5 = pneg %p1059_p3 }
  0x7d   : > { %p1065_p9 = pnand %p1064_p7, %p1060_p5 }
  0x82   : > { %639 = vperm.xlu2 %974, %v595_v13  }
  0x8a   : > { %685 = vperm.xlu2 %974, %v590_v14  }
  0x8f   : > { %v426_v15 = vpop.permute.xlu2 %425 }
  0x97   : > { %v428_v18 = vpop.permute.xlu2 %427 }
  0x98   : > { %v430_v42 = vsel %vm429_vm0, %v426_v15, %v428_v18  ;;  %v431_v43 = vsel %vm429_vm0, %v428_v18, %v426_v15  ;;  %v539_v18 = vperm.slane %v1335_v33, 7 }
  0x9f   : > { %v445_v21 = vpop.permute.xlu2 %444 }
  0xa6   : > { %v404_v16 = vpop.permute.xlu1 %403  ;;  %v417_v17 = vpop.permute.xlu0 %416 }
  0xa7   : > { %v419_v52 = vmul.f32 %v417_v17, %v412_v39  ;;  %v420_v56 = vmul.f32 %v417_v17, %v413_v40 }
  0xa8   : > { %v464_v24 = vpop.permute.xlu2 %463 }
  0xae   : > { %v406_v19 = vpop.permute.xlu1 %405 }
  0xaf   : > { %v436_v20 = vpop.permute.xlu0 %435  ;;  %v411_v57 = vsel %vm409_vm1, %v406_v19, %v404_v16  ;;  %v410_v61 = vsel %vm409_vm1, %v404_v16, %v406_v19  ;;  %v540_v19 = vperm.slane %v1337_v34, 7 }
  0xb0   : > { %v1327_v27 = vpop.permute.xlu2 %504  ;;  %v438_v45 = vmul.f32 %v436_v20, %v432_v36  ;;  %v439_v49 = vmul.f32 %v436_v20, %v433_v37  ;;  %v421_v7 = vmul.f32 %v419_v52, %v411_v57  ;;  %v422_v11 = vmul.f32 %v420_v56, %v410_v61 }
  0xb1   : > { %v507_v17 = vmul.f32 %v1327_v27, %v501_v46 }
  0xb2   : > { %v440_v62 = vmul.f32 %v438_v45, %v431_v43  ;;  %v441_v2 = vmul.f32 %v439_v49, %v430_v42 }
  0xb4   : > { %v442_v16 = vadd.f32 %v440_v62, %v421_v7  ;;  %v443_v20 = vadd.f32 %v441_v2, %v422_v11 }
  0xb6   : > { %v455_v22 = vpop.permute.xlu1 %454 }
  0xb7   : > { %v447_v23 = vpop.permute.xlu0 %446  ;;  %v457_v53 = vmul.f32 %v455_v22, %v451_v41  ;;  %v458_v58 = vmul.f32 %v455_v22, %v452_v44 }
  0xb8   : > { %v450_v59 = vsel %vm448_vm2, %v447_v23, %v445_v21  ;;  %v449_v63 = vsel %vm448_vm2, %v445_v21, %v447_v23 }
  0xb9   : > { %v1333_v32 = vpop.permute.xlu2 %523  ;;  %v459_v8 = vmul.f32 %v457_v53, %v450_v59  ;;  %v460_v12 = vmul.f32 %v458_v58, %v449_v63 }
  0xba   : > { %v526_v36 = vmul.f32 %v1333_v32, %v520_v51 }
  0xbb   : > { %v461_v23 = vadd.f32 %v459_v8, %v442_v16 }
  0xbf   : > { %v474_v25 = vpop.permute.xlu1 %473  ;;  %v466_v26 = vpop.permute.xlu0 %465 }
  0xc0   : > { %v476_v4 = vmul.f32 %v474_v25, %v470_v48  ;;  %v477_v6 = vmul.f32 %v474_v25, %v471_v50  ;;  %v468_v9 = vsel %vm467_vm3, %v464_v24, %v466_v26  ;;  %v469_v10 = vsel %vm467_vm3, %v466_v26, %v464_v24  ;;  %v978_v48 = vld [vmem:[#allocation5 + $0x18] ss:$0 sm:$0xff] }
  0xc1   : > { %v508_v24 = vmul.f32 %v1327_v27, %v502_v47  ;;  %v527_v27 = vmul.f32 %v1333_v32, %v521_v0  ;;  %v977_v47 = vld [vmem:[#allocation5 + $0x10] ss:$0 sm:$0xff] }
  0xc2   : > { %v543_v1 = vpop.permute.xlu2 %542  ;;  %v478_v21 = vmul.f32 %v476_v4, %v469_v10  ;;  %v479_v22 = vmul.f32 %v477_v6, %v468_v9 }
  0xc3   : > { %v546_v43 = vmul.f32 %v543_v1, %v540_v19  ;;  %v1133_v19 = vmov 256.0  }
  0xc4   : > { %v480_v40 = vadd.f32 %v478_v21, %v461_v23  ;;  %979 = vrcp.f32 %v1133_v19 }
  0xc7   : > { %v1329_v29 = vpop.permute.xlu0 %494 }
  0xc8   : > { %v486_v28 = vpop.permute.xlu1 %485 }
  0xc9   : > { %v488_v13 = vmul.f32 %v486_v28, %v482_v54  ;;  %v489_v14 = vmul.f32 %v486_v28, %v483_v55  ;;  %v462_v28 = vadd.f32 %v460_v12, %v443_v20 }
  0xca   : > { %v980_v20 = vpop.eup %979 }
  0xcb   : > { %v490_v30 = vmul.f32 %v488_v13, %v1296_v3  ;;  %v491_v33 = vmul.f32 %v489_v14, %v1301_v5  ;;  %v481_v41 = vadd.f32 %v479_v22, %v462_v28  ;;  %v562_v3 = vpop.permute.xlu2 %561  ;;  %v600_v21 = vmul.f32 256.0, %v980_v20 }
  0xcc   : > { %v564_v54 = vmul.f32 %v977_v47, %v562_v3  ;;  %v565_v55 = vmul.f32 %v978_v48, %v562_v3  ;;  %vm604_vm8 = vweird.f32 %v980_v20  ;;  %v591_v3 = vld [vmem:[%s1453_s9 + $0x8] sm:$0xff] }
  0xcd   : > { %v492_v45 = vadd.f32 %v490_v30, %v480_v40  ;;  %v493_v46 = vadd.f32 %v491_v33, %v481_v41  ;;  %v601_v22 = vsub.f32 1.0, %v600_v21  ;;  %v592_v30 = vld [vmem:[%s1448_s4] sm:$0x3] }
  0xcf   : > { %v1342_v38 = vpop.permute.xlu0 %513  ;;  %v602_v23 = vmul.f32 %v980_v20, %v601_v22 }
  0xd0   : > { %v497_v35 = vpop.permute.xlu1 %496 }
  0xd1   : > { %v499_v25 = vsel %vm498_vm4, %v1329_v29, %v497_v35  ;;  %v500_v26 = vsel %vm498_vm4, %v497_v35, %v1329_v29  ;;  %v545_v35 = vmul.f32 %v543_v1, %v539_v18  ;;  %v593_v18 = vld [vmem:[%s1449_s5] sm:$0x3] }
  0xd2   : > { %v509_v42 = vmul.f32 %v507_v17, %v499_v25  ;;  %v510_v29 = vmul.f32 %v508_v24, %v500_v26  ;;  %609 = vperm.xlu1 %975, %v593_v18   ;;  %v603_v24 = vadd.f32 %v980_v20, %v602_v23 }
  0xd4   : > { %v511_v32 = vadd.f32 %v509_v42, %v492_v45  ;;  %v512_v51 = vadd.f32 %v510_v29, %v493_v46  ;;  %v574_v4 = vpop.permute.xlu2 %573  ;;  %v605_v25 = vsel %vm604_vm8, %v980_v20, %v603_v24 }
  0xd7   : > { %v533_v15 = vpop.permute.xlu0 %532 }
  0xd8   : > { %v516_v60 = vpop.permute.xlu1 %515 }
  0xd9   : > { %v518_v37 = vsel %vm517_vm5, %v1342_v38, %v516_v60  ;;  %v519_v39 = vsel %vm517_vm5, %v516_v60, %v1342_v38 }
  0xda   : > { %v528_v49 = vmul.f32 %v526_v36, %v518_v37  ;;  %v529_v50 = vmul.f32 %v527_v27, %v519_v39  ;;  %v594_v37 = vld [vmem:[%s1450_s6] sm:$0xff] }
  0xdc   : > { %v530_v56 = vadd.f32 %v528_v49, %v511_v32  ;;  %v531_v57 = vadd.f32 %v529_v50, %v512_v51  ;;  %v640_v39 = vpop.permute.xlu2 %639  ;;  %v885_v50 = vld [vmem:[%s1452_s8] sm:$0xff] }
  0xdf   : > { %v552_v53 = vpop.permute.xlu0 %551 }
  0xe0   : > { %v535_v34 = vpop.permute.xlu1 %534 }
  0xe1   : > { %v537_v44 = vsel %vm536_vm6, %v533_v15, %v535_v34  ;;  %v538_v5 = vsel %vm536_vm6, %v535_v34, %v533_v15 }
  0xe2   : > { %v547_v38 = vmul.f32 %v545_v35, %v537_v44  ;;  %v548_v52 = vmul.f32 %v546_v43, %v538_v5 }
  0xe4   : > { %v549_v61 = vadd.f32 %v547_v38, %v530_v56  ;;  %v550_v62 = vadd.f32 %v548_v52, %v531_v57  ;;  %v686_v32 = vpop.permute.xlu2 %685 }
  0xe8   : > { %v554_v58 = vpop.permute.xlu1 %553 }
  0xe9   : > { %v556_v59 = vsel %vm555_vm7, %v552_v53, %v554_v58  ;;  %v557_v60 = vsel %vm555_vm7, %v554_v58, %v552_v53 }
  0xea   : > { %v566_v63 = vmul.f32 %v564_v54, %v556_v59  ;;  %v567_v0 = vmul.f32 %v565_v55, %v557_v60 }
  0xec   : > { %v568_v1 = vadd.f32 %v566_v63, %v549_v61  ;;  %v569_v2 = vadd.f32 %v567_v0, %v550_v62 }
  0xee   : > { %v576_v31 = vadd.f32 %v574_v4, %v568_v1  ;;  %v577_v6 = vadd.f32 %v574_v4, %v569_v2 }
  0xf0   : > { %v578_v7 = vadd.f32 3.0, %v576_v31  ;;  %v579_v8 = vadd.f32 3.0, %v577_v6 }
  0xf2   : > { %v580_v9 = vmax.f32 %v578_v7, 0.0  ;;  %v581_v10 = vmax.f32 %v579_v8, 0.0 }
  0xf4   : > { %v582_v11 = vmin.f32 %v580_v9, 6.0  ;;  %v583_v12 = vmin.f32 %v581_v10, 6.0 }
  0xf6   : > { %v584_v13 = vmul.f32 0.16666667, %v582_v11  ;;  %v585_v14 = vmul.f32 0.16666667, %v583_v12 }
  0xf8   : > { %v586_v15 = vmul.f32 %v584_v13, %v576_v31  ;;  %v587_v16 = vmul.f32 %v585_v14, %v577_v6 }
  0xfa   : > { %v596_v17 = vadd.f32 %v587_v16, %v586_v15 }
  0xfc   : > { %597 = vadd.xlane.f32.xlu0 %v596_v17 }
 0x144   : > { %v610_v33 = vpop.permute.xlu1 %609 }
 0x16f   : > { %v598_v26 = vpop.xlane.xlu0 %597 }
 0x170   : > { %v606_v28 = vmul.f32 %v605_v25, %v598_v26 }
 0x172   : > { %631 = vmatpush.msra.mxu0 %v606_v28 }
 0x173   : > { %870 = vmatmul.msk.f32.vlgmr.msra.gmra.mxu0 %vm612_vm9, %v592_v30 }
 0x1f0   : > { %v633_v34 = vpop.f32.mrf.mxu0 }
 0x1f1   : > { %v634_v36 = vadd.f32 %v633_v34, %v610_v33 }
 0x1f3   : > { %v636_v27 = vmax.f32 %v634_v36, 0.0 }
 0x1f5   : > { %871 = vmatpush.msk.msra.mxu1 %vm646_vm10, %v636_v27 }
 0x1f6   : > { %872 = vmatmul.msk.f32.vlgmr.msra.gmra.mxu1 %vm642_vm11, %v594_v37 }
 0x273   : > { %v667_v40 = vpop.f32.mrf.mxu1 }
 0x274   : > { %v668_v41 = vadd.f32 %v667_v40, %v640_v39 }
 0x276   : > { %v670_v42 = vadd.f32 3.0, %v668_v41 }
 0x278   : > { %v671_v29 = vmax.f32 %v670_v42, 0.0 }
 0x27a   : > { %v672_v35 = vmin.f32 %v671_v29, 6.0 }
 0x27c   : > { %v673_v43 = vmul.f32 0.16666667, %v672_v35 }
 0x27e   : > { %676 = vperm.xlu1 %975, %v673_v43  }
 0x286   : > { %690 = vperm.xlu1 %975, %v591_v3  }
 0x2f0   : > { %v677_v44 = vpop.permute.xlu1 %676 }
 0x2f1   : > { %v679_v5 = vmul.f32 %v677_v44, %v586_v15  ;;  %v680_v45 = vmul.f32 %v677_v44, %v587_v16 }
 0x2f3   : > { %v681_v46 = vpack.c.bf16 %v679_v5, %v679_v5  ;;  %v682_v47 = vpack.c.bf16 %v680_v45, %v680_v45 }
 0x2f5   : > { %v703_v48 = vsel %vm701_vm12, %v681_v46, 0  ;;  %v706_v49 = vsel %vm701_vm12, %v682_v47, 0 }
 0x2f6   : > { %715 = vmatpush.bf16.msra.mxu2 %v703_v48  ;;  %729 = vmatpush.bf16.msra.mxu3 %v706_v49 }
 0x2f8   : > { %v691_v58 = vpop.permute.xlu1 %690 }
 0x2f9   : > { %877 = vmatmul.msk.bf16.vlgmr.msra.gmra.mxu2 %vm612_vm9, %v885_v50  ;;  %878 = vmatmul.msk.bf16.vlgmr.msra.gmra.mxu3 %vm612_vm9, %v885_v50 }
 0x37c   : > { %v717_v51 = vpop.f32.mrf.mxu2  ;;  %v731_v38 = vpop.f32.mrf.mxu3 }
 0x37d   : > { %v718_v52 = vadd.f32 %v717_v51, %v686_v32  ;;  %v732_v53 = vadd.f32 %v731_v38, %v686_v32 }
 0x37f   : > { %v736_v54 = vadd.f32 3.0, %v718_v52  ;;  %v737_v55 = vadd.f32 3.0, %v732_v53 }
 0x381   : > { %v740_v56 = vmax.f32 %v736_v54, 0.0  ;;  %v741_v57 = vmax.f32 %v737_v55, 0.0 }
 0x383   : > { %v744_v59 = vmin.f32 %v740_v56, 6.0  ;;  %v745_v60 = vmin.f32 %v741_v57, 6.0 }
 0x384   : > { %v719_v61 = vpop.f32.mrf.mxu2  ;;  %v733_v62 = vpop.f32.mrf.mxu3 }
 0x385   : > { %v748_v63 = vmul.f32 0.16666667, %v744_v59  ;;  %v749_v0 = vmul.f32 0.16666667, %v745_v60  ;;  %v720_v1 = vadd.f32 %v719_v61, %v691_v58  ;;  %v734_v2 = vadd.f32 %v733_v62, %v691_v58 }
 0x387   : > { %v752_v4 = vmul.f32 %v748_v63, %v718_v52  ;;  %v753_v31 = vmul.f32 %v749_v0, %v732_v53  ;;  %v738_v6 = vadd.f32 3.0, %v720_v1  ;;  %v739_v7 = vadd.f32 3.0, %v734_v2 }
 0x389   : > { %756 = vst [vmem:[%s394_s15] sm:$0xff] %v752_v4  ;;  %v742_v8 = vmax.f32 %v738_v6, 0.0  ;;  %v743_v9 = vmax.f32 %v739_v7, 0.0 }
 0x38a   : > { %757 = vst [vmem:[%s394_s15 + $0x8] sm:$0xff] %v753_v31 }
 0x38b   : > { %v746_v10 = vmin.f32 %v742_v8, 6.0  ;;  %v747_v11 = vmin.f32 %v743_v9, 6.0 }
 0x38d   : > { %v750_v12 = vmul.f32 0.16666667, %v746_v10  ;;  %v751_v13 = vmul.f32 0.16666667, %v747_v11 }
 0x38f   : > { %v754_v14 = vmul.f32 %v750_v12, %v720_v1  ;;  %v755_v15 = vmul.f32 %v751_v13, %v734_v2 }
 0x391   : > { %758 = vst [vmem:[%s394_s15 + $0x10] sm:$0xff] %v754_v14 }
 0x392   : > { %759 = vst [vmem:[%s394_s15 + $0x18] sm:$0xff] %v755_v15 }
 0x393   : > { %1068 = shalt.err (!%p1065_p9)
}
 0x394   : > { %s1134_s17 = smov 256  }
 0x395   : > { %893 = dma.vmem_to_hbm [thread:$0]  (%p1250_p13), %s774_s28, 512, %s776_s26, %s761_s20, %s1134_s17, %s1134_s17, %s1119_s27  }
 0x396 PF: > { %s790_s15 = sand.u32 1, %s1099_s13   ;;  %p1468_p10 = scmp.ge.s32.totalorder %s1111_s16, 2 }
 0x397   : > { %s791_s21 = scalar_lea.sflag [#allocation4], %s790_s15 }
 0x398   : > { %p904_p11 = pnand %p1468_p10, %p1255_p4 }
 0x39a   : > { %p905_p0 = pneg %p904_p11 }
 0x39c   : > { %1094 = dma.done.wait (%p905_p0), %s791_s21, 512  }
 0x39d   : > { %1096 = vsyncadd (%p905_p0), %s791_s21, 4294966784  ;;  %s1469_s16 = sld [smem:[#allocation12_spill]]  ;;  %s1472_s13 = smov %s1103_s14 }
 0x39e   : > { %s1470_s30 = sld [smem:[#allocation11_spill]] }
 0x39f   : > { %s1471_s15 = sld [smem:[#allocation13_spill]] }
 0x3a3   : > { %p24_p2 = scmp.ge.s32.totalorder %s1469_s16, 4  }
 0x3a4   : > { %s1473_s14 = smov %s1470_s30 }
 0x3a5   :  { %26 = sbr.rel (!%p24_p2) target bundleno = 8 (0x8), region = 109 }
 0x3aa   :  { %797 = vsyncpa [#allocation3], 1 }
 0x3ab   :  { %799 = vsyncpa [#allocation3 + $0x1], 1 }
 0x3ac   :  { %800 = vsyncpa [#allocation6], 1 }
 0x3ad   :  { %801 = vsyncpa [#allocation4], 1 }
 0x3ae   :  { %803 = vsyncpa [#allocation4 + $0x1], 1 }

</bundles_post_ra>
